<compile_context>
chip_gen: v7x
topology: tpu7x:2x2x1
jax: 0.10.0
libtpu: 0.0.40
codegen_flags: <defaults>
</compile_context>

<pallas_src>
import jax
import jax.numpy as jnp
from jax.experimental import pallas as pl
from jax.experimental.pallas import tpu as pltpu


def _round_up(x, m):
    return ((x + m - 1) // m) * m


def _make_conv2d_kernel(kh, kw, tile_oh, ow_pad):
    def kernel(xm_ref, xh_ref, w_ref, b_ref, o_ref):
        # xm_ref: (tile_oh, W_pad)  VMEM  main rows of this tile
        # xh_ref: (halo,   W_pad)   VMEM  halo rows just below the tile
        # w_ref : (kh*kw,)          SMEM  flattened weights
        # b_ref : (1,)              SMEM  scalar bias
        # o_ref : (tile_oh, ow_pad) VMEM  output tile (lane-dense width)
        xv = jnp.concatenate([xm_ref[...], xh_ref[...]], axis=0)

        acc = None
        for i in range(kh):
            # Sublane shift, done in-register on the already-loaded value.
            xi = xv[i:i + tile_oh, :]
            for j in range(kw):
                # Lane shift, also in-register (XLU relayout, no extra VMEM load).
                tap = xi[:, j:j + ow_pad] * w_ref[i * kw + j]
                acc = tap if acc is None else acc + tap

        o_ref[...] = acc + b_ref[0]

    return kernel


def conv2d_pallas(x, weight, bias, *, tile_oh=None,
                  vmem_budget_bytes=24 * 1024 * 1024):
    """x: (H, W), weight: (kh, kw), bias: (1,) -> (H-kh+1, W-kw+1) float32."""
    x = jnp.asarray(x, jnp.float32)
    weight = jnp.asarray(weight, jnp.float32)
    bias = jnp.asarray(bias, jnp.float32).reshape((1,))

    h, w = x.shape
    kh, kw = weight.shape
    oh, ow = h - kh + 1, w - kw + 1

    halo = _round_up(max(kh - 1, 1), 8)      # sublane-aligned halo block height
    ow_pad = _round_up(ow, 128)              # lane-dense output width
    w_pad = ow_pad + kw - 1                  # input width needed for that output

    if tile_oh is None:
        # Double-buffered input row + output row per tile; keep well under the
        # v7x 64-MiB VMEM (scoped limit raised below).
        bytes_per_row = 2 * 4 * (w_pad + ow_pad)
        tile_oh = min(512, max(halo, vmem_budget_bytes // bytes_per_row))
    tile_oh = min(tile_oh, _round_up(oh, halo))      # don't over-tile small inputs
    tile_oh = max(halo, (tile_oh // halo) * halo)    # multiple of halo (and of 8)

    oh_pad = _round_up(oh, tile_oh)
    h_pad = oh_pad + halo                    # extra zero rows back the halo reads
    nt = oh_pad // tile_oh
    hblk = tile_oh // halo

    x_pad = jnp.pad(x, ((0, h_pad - h), (0, w_pad - w)))   # zero-filled padding
    w_flat = weight.reshape(-1)

    kernel = _make_conv2d_kernel(kh, kw, tile_oh, ow_pad)

    out = pl.pallas_call(
        kernel,
        out_shape=jax.ShapeDtypeStruct((oh_pad, ow_pad), jnp.float32),
        grid=(nt,),
        in_specs=[
            # Main rows of tile t: [t*tile_oh, (t+1)*tile_oh)
            pl.BlockSpec((tile_oh, w_pad), lambda t: (t, 0)),
            # Halo rows just below the tile: [(t+1)*tile_oh, (t+1)*tile_oh + halo)
            pl.BlockSpec((halo, w_pad), lambda t: ((t + 1) * hblk, 0)),
            pl.BlockSpec(memory_space=pltpu.MemorySpace.SMEM),   # weight (flat)
            pl.BlockSpec(memory_space=pltpu.MemorySpace.SMEM),   # bias
        ],
        out_specs=pl.BlockSpec((tile_oh, ow_pad), lambda t: (t, 0)),
        compiler_params=pltpu.CompilerParams(
            dimension_semantics=("parallel",),        # shard row tiles on v7x's 2 TCs
            vmem_limit_bytes=48 * 1024 * 1024,
        ),
    )(x_pad, x_pad, w_flat, bias)

    return out[:oh, :ow]


def _reference(x, weight, bias):
    """Pure-JAX reference matching corr2d + bias."""
    h, w = x.shape
    kh, kw = weight.shape
    oh, ow = h - kh + 1, w - kw + 1
    out = jnp.zeros((oh, ow), jnp.float32)
    for i in range(kh):
        for j in range(kw):
            out = out + x[i:i + oh, j:j + ow] * weight[i, j]
    return out + bias[0]


if __name__ == "__main__":
    key = jax.random.PRNGKey(0)
    k_w, k_b, k_x, k_x2 = jax.random.split(key, 4)

    kernel_size = (3, 3)                       # Conv2d(kernel_size=(3, 3))
    weight = jax.random.normal(k_w, kernel_size, dtype=jnp.float32)   # torch.randn(kernel_size)
    bias = jax.random.normal(k_b, (1,), dtype=jnp.float32)            # torch.randn(1)

    # Small unbatched (H, W) input, as the module's forward expects.
    x = jax.random.normal(k_x, (16, 16), dtype=jnp.float32)
    out = jax.block_until_ready(conv2d_pallas(x, weight, bias))
    ref = _reference(x, weight, bias)
    assert out.shape == (14, 14)
    assert jnp.allclose(out, ref, atol=1e-5, rtol=1e-5)

    # Second check: force a small row tile so the multi-tile / halo path (the
    # pipelined production configuration) is exercised at small shapes.
    x2 = jax.random.normal(k_x2, (40, 33), dtype=jnp.float32)
    out2 = jax.block_until_ready(conv2d_pallas(x2, weight, bias, tile_oh=16))
    ref2 = _reference(x2, weight, bias)
    assert out2.shape == (38, 31)
    assert jnp.allclose(out2, ref2, atol=1e-5, rtol=1e-5)

    print("KERNEL_OK")
</pallas_src>

<mosaic_0001>
module attributes {stable_mosaic.version = 11 : i64} {
  func.func @kernel(%arg0: i32, %arg1: memref<16x130xf32, #tpu.memory_space<vmem>>, %arg2: memref<8x130xf32, #tpu.memory_space<vmem>>, %arg3: memref<9xf32, #tpu.memory_space<smem>>, %arg4: memref<1xf32, #tpu.memory_space<smem>>, %arg5: memref<16x128xf32, #tpu.memory_space<vmem>>) attributes {dimension_semantics = [#tpu.dimension_semantics<parallel>], iteration_bounds = array<i64: 1>, scalar_prefetch = 0 : i64, scratch_operands = 0 : i64, tpu.core_type = #tpu.core_type<tc>, window_params = [{transform_indices = @transform_0, window_bounds = array<i64: 16, 130>}, {transform_indices = @transform_1, window_bounds = array<i64: 8, 130>}, {transform_indices = @transform_2, window_bounds = array<i64: 9>}, {transform_indices = @transform_3, window_bounds = array<i64: 1>}, {transform_indices = @transform_4, window_bounds = array<i64: 16, 128>}]} {
    %c0 = arith.constant 0 : index
    %c0_0 = arith.constant 0 : index
    %0 = vector.load %arg1[%c0, %c0_0] : memref<16x130xf32, #tpu.memory_space<vmem>>, vector<16x130xf32>
    %c0_1 = arith.constant 0 : index
    %c0_2 = arith.constant 0 : index
    %1 = vector.load %arg2[%c0_1, %c0_2] : memref<8x130xf32, #tpu.memory_space<vmem>>, vector<8x130xf32>
    %2 = tpu.concatenate %0, %1 in 0 : vector<16x130xf32>, vector<8x130xf32> -> vector<24x130xf32>
    %3 = vector.extract_strided_slice %2 {offsets = [0, 0], sizes = [16, 130], strides = [1, 1]} : vector<24x130xf32> to vector<16x130xf32>
    %4 = vector.extract_strided_slice %3 {offsets = [0, 0], sizes = [16, 128], strides = [1, 1]} : vector<16x130xf32> to vector<16x128xf32>
    %c0_3 = arith.constant 0 : index
    %5 = memref.load %arg3[%c0_3] : memref<9xf32, #tpu.memory_space<smem>>
    %6 = vector.broadcast %5 : f32 to vector<16x128xf32>
    %7 = arith.mulf %4, %6 : vector<16x128xf32>
    %8 = vector.extract_strided_slice %3 {offsets = [0, 1], sizes = [16, 128], strides = [1, 1]} : vector<16x130xf32> to vector<16x128xf32>
    %c1 = arith.constant 1 : index
    %9 = memref.load %arg3[%c1] : memref<9xf32, #tpu.memory_space<smem>>
    %10 = vector.broadcast %9 : f32 to vector<16x128xf32>
    %11 = arith.mulf %8, %10 : vector<16x128xf32>
    %12 = arith.addf %7, %11 : vector<16x128xf32>
    %13 = vector.extract_strided_slice %3 {offsets = [0, 2], sizes = [16, 128], strides = [1, 1]} : vector<16x130xf32> to vector<16x128xf32>
    %c2 = arith.constant 2 : index
    %14 = memref.load %arg3[%c2] : memref<9xf32, #tpu.memory_space<smem>>
    %15 = vector.broadcast %14 : f32 to vector<16x128xf32>
    %16 = arith.mulf %13, %15 : vector<16x128xf32>
    %17 = arith.addf %12, %16 : vector<16x128xf32>
    %18 = vector.extract_strided_slice %2 {offsets = [1, 0], sizes = [16, 130], strides = [1, 1]} : vector<24x130xf32> to vector<16x130xf32>
    %19 = vector.extract_strided_slice %18 {offsets = [0, 0], sizes = [16, 128], strides = [1, 1]} : vector<16x130xf32> to vector<16x128xf32>
    %c3 = arith.constant 3 : index
    %20 = memref.load %arg3[%c3] : memref<9xf32, #tpu.memory_space<smem>>
    %21 = vector.broadcast %20 : f32 to vector<16x128xf32>
    %22 = arith.mulf %19, %21 : vector<16x128xf32>
    %23 = arith.addf %17, %22 : vector<16x128xf32>
    %24 = vector.extract_strided_slice %18 {offsets = [0, 1], sizes = [16, 128], strides = [1, 1]} : vector<16x130xf32> to vector<16x128xf32>
    %c4 = arith.constant 4 : index
    %25 = memref.load %arg3[%c4] : memref<9xf32, #tpu.memory_space<smem>>
    %26 = vector.broadcast %25 : f32 to vector<16x128xf32>
    %27 = arith.mulf %24, %26 : vector<16x128xf32>
    %28 = arith.addf %23, %27 : vector<16x128xf32>
    %29 = vector.extract_strided_slice %18 {offsets = [0, 2], sizes = [16, 128], strides = [1, 1]} : vector<16x130xf32> to vector<16x128xf32>
    %c5 = arith.constant 5 : index
    %30 = memref.load %arg3[%c5] : memref<9xf32, #tpu.memory_space<smem>>
    %31 = vector.broadcast %30 : f32 to vector<16x128xf32>
    %32 = arith.mulf %29, %31 : vector<16x128xf32>
    %33 = arith.addf %28, %32 : vector<16x128xf32>
    %34 = vector.extract_strided_slice %2 {offsets = [2, 0], sizes = [16, 130], strides = [1, 1]} : vector<24x130xf32> to vector<16x130xf32>
    %35 = vector.extract_strided_slice %34 {offsets = [0, 0], sizes = [16, 128], strides = [1, 1]} : vector<16x130xf32> to vector<16x128xf32>
    %c6 = arith.constant 6 : index
    %36 = memref.load %arg3[%c6] : memref<9xf32, #tpu.memory_space<smem>>
    %37 = vector.broadcast %36 : f32 to vector<16x128xf32>
    %38 = arith.mulf %35, %37 : vector<16x128xf32>
    %39 = arith.addf %33, %38 : vector<16x128xf32>
    %40 = vector.extract_strided_slice %34 {offsets = [0, 1], sizes = [16, 128], strides = [1, 1]} : vector<16x130xf32> to vector<16x128xf32>
    %c7 = arith.constant 7 : index
    %41 = memref.load %arg3[%c7] : memref<9xf32, #tpu.memory_space<smem>>
    %42 = vector.broadcast %41 : f32 to vector<16x128xf32>
    %43 = arith.mulf %40, %42 : vector<16x128xf32>
    %44 = arith.addf %39, %43 : vector<16x128xf32>
    %45 = vector.extract_strided_slice %34 {offsets = [0, 2], sizes = [16, 128], strides = [1, 1]} : vector<16x130xf32> to vector<16x128xf32>
    %c8 = arith.constant 8 : index
    %46 = memref.load %arg3[%c8] : memref<9xf32, #tpu.memory_space<smem>>
    %47 = vector.broadcast %46 : f32 to vector<16x128xf32>
    %48 = arith.mulf %45, %47 : vector<16x128xf32>
    %49 = arith.addf %44, %48 : vector<16x128xf32>
    %c0_4 = arith.constant 0 : index
    %50 = memref.load %arg4[%c0_4] : memref<1xf32, #tpu.memory_space<smem>>
    %51 = vector.broadcast %50 : f32 to vector<16x128xf32>
    %52 = arith.addf %49, %51 : vector<16x128xf32>
    %c0_5 = arith.constant 0 : index
    %c0_6 = arith.constant 0 : index
    %53 = vector.load %arg5[%c0_5, %c0_6] : memref<16x128xf32, #tpu.memory_space<vmem>>, vector<16x128xf32>
    tpu.vector_store %arg5[%c0_5, %c0_6], %52 {strides = array<i32>} : memref<16x128xf32, #tpu.memory_space<vmem>>, vector<16x128xf32>,
    return
  }
  func.func @transform_0(%arg0: i32) -> (i32, i32) {
    %c0_i32 = arith.constant 0 : i32
    %c0_i32_0 = arith.constant 0 : i32
    return %arg0, %c0_i32 : i32, i32
  }
  func.func @transform_1(%arg0: i32) -> (i32, i32) {
    %c1_i32 = arith.constant 1 : i32
    %0 = arith.addi %arg0, %c1_i32 : i32
    %c2_i32 = arith.constant 2 : i32
    %1 = arith.muli %0, %c2_i32 : i32
    %c0_i32 = arith.constant 0 : i32
    %c0_i32_0 = arith.constant 0 : i32
    return %1, %c0_i32 : i32, i32
  }
  func.func @transform_2(%arg0: i32) -> i32 {
    %c0_i32 = arith.constant 0 : i32
    %c0_i32_0 = arith.constant 0 : i32
    return %c0_i32 : i32
  }
  func.func @transform_3(%arg0: i32) -> i32 {
    %c0_i32 = arith.constant 0 : i32
    %c0_i32_0 = arith.constant 0 : i32
    return %c0_i32 : i32
  }
  func.func @transform_4(%arg0: i32) -> (i32, i32) {
    %c0_i32 = arith.constant 0 : i32
    %c0_i32_0 = arith.constant 0 : i32
    return %arg0, %c0_i32 : i32, i32
  }
}

</mosaic_0001>

<bundles_post_ra>
// kernel: tpu_custom_call.1
= control target key start
LH: loop header
LB: loop body
LE: loop exit
PB: predicated region body
PF: predicated region fallthrough
CT: control target
= control target key end

     0   :  { %10 = vsyncpa [#allocation4], 0  ;;  %s652_s0 = inlined_call_operand.hbm [shape: f32[24,130], index: 0, kind: input, shape index: {}]   ;;  %s653_s1 = inlined_call_operand.hbm [shape: f32[24,130], index: 1, kind: input, shape index: {}]   ;;  %s654_s2 = inlined_call_operand.vmem [shape: f32[9], index: 2, kind: input, shape index: {}]   ;;  %s655_s3 = inlined_call_operand.<no memory space> [shape: f32[1], index: 3, kind: input, shape index: {}]   ;;  %s656_s4 = inlined_call_operand.hbm [shape: f32[16,128], index: 4, kind: output, shape index: {}]  }
   0x1   :  { %11 = vsyncpa [#allocation8], 0 }
   0x2   :  { %12 = vsyncpa [#allocation6], 0 }
   0x3   :  { %13 = vsyncpa [#allocation5], 0  ;;  %s446_s15 = smov [#allocation3]   ;;  %s484_s19 = scalar_lea.hbm %s653_s1, 512 }
   0x4   :  { %s19_s16 = sshll.u32 %s446_s15, 4  ;;  %s357_s22 = scalar_lea.hbm %s652_s0, 512  ;;  %s20_s16 = int_to_ptr.vmem [resolvable:$true] %s19_s16 }
   0x5   :  { %p358_p0 = scmp.ne.s32.totalorder %s652_s0, %s357_s22  ;;  %s359_s27 = scalar_lea.hbm %s652_s0, 768 }
   0x6   :  { %p360_p1 = scmp.lt.u32.totalorder %s359_s27, %s357_s22  ;;  %p361_p2 = scmp.lt.u32.totalorder %s357_s22, %s652_s0 }
   0x8   :  { %p362_p3 = por %p361_p2, %p360_p1 }
   0xa   :  { %p363_p4 = pnand %p362_p3, %p358_p0 }
   0xc   :  { %366 = shalt.err (!%p363_p4)
}
   0xd   :  { %s367_s30 = scalar_lea.vmem %s20_s16, 512  ;;  %p372_p6 = scmp.lt.s32.totalorder %s20_s16, %s20_s16 }
   0xe   :  { %p368_p5 = scmp.ne.s32.totalorder %s20_s16, %s367_s30  ;;  %p373_p7 = scmp.lt.s32.totalorder %s367_s30, %s367_s30 }
  0x10   :  { %p374_p8 = por %p373_p7, %p372_p6 }
  0x12   :  { %p375_p9 = pnand %p374_p8, %p368_p5 }
  0x14   :  { %378 = shalt.err (!%p375_p9)
}
  0x15   :  { %s447_s5 = smov 256   ;;  %s448_s6 = smov 16  }
  0x16   :  { %25 = dma.hbm_to_vmem [thread:$0]  %s652_s0, 512, %s20_s16, [#allocation4], %s447_s5, %s447_s5, %s448_s6  }
  0x17   :  { %s47_s11 = sshll.u32 %s654_s2, 4  ;;  %s449_s12 = smov [#allocation7]   ;;  %s48_s11 = int_to_ptr.vmem [resolvable:$true] %s47_s11 }
  0x18   :  { %s37_s13 = sshll.u32 %s449_s12, 4  ;;  %s403_s17 = scalar_lea.hbm %s653_s1, 768  ;;  %s38_s13 = int_to_ptr.vmem [resolvable:$true] %s37_s13 }
  0x19   :  { %p380_p10 = scmp.ne.s32.totalorder %s484_s19, %s403_s17  ;;  %p382_p11 = scmp.lt.u32.totalorder %s484_s19, %s653_s1 }
  0x1a   :  { %p383_p12 = scmp.lt.u32.totalorder %s403_s17, %s403_s17  ;;  %p385_p0 = scmp.lt.u32.totalorder %s403_s17, %s484_s19 }
  0x1c   :  { %p384_p13 = por %p383_p12, %p382_p11 }
  0x1e   :  { %p386_p1 = por %p385_p0, %p384_p13 }
  0x20   :  { %p387_p2 = pnand %p386_p1, %p380_p10 }
  0x22   :  { %390 = shalt.err (!%p387_p2)
}
  0x23   :  { %s391_s0 = scalar_lea.vmem %s38_s13, 256  ;;  %p396_p4 = scmp.lt.s32.totalorder %s38_s13, %s38_s13 }
  0x24   :  { %p392_p3 = scmp.ne.s32.totalorder %s38_s13, %s391_s0  ;;  %p397_p5 = scmp.lt.s32.totalorder %s391_s0, %s391_s0 }
  0x26   :  { %p398_p6 = por %p397_p5, %p396_p4 }
  0x28   :  { %p399_p7 = pnand %p398_p6, %p392_p3 }
  0x2a   :  { %402 = shalt.err (!%p399_p7)
}
  0x2b   :  { %40 = dma.hbm_to_vmem [thread:$0]  %s484_s19, 256, %s38_s13, [#allocation8]  }
  0x2c   :  { %s404_s2 = scalar_lea.vmem %s48_s11, 16  ;;  %p409_p9 = scmp.lt.s32.totalorder %s48_s11, %s48_s11 }
  0x2d   :  { %p405_p8 = scmp.ne.s32.totalorder %s48_s11, %s404_s2  ;;  %p410_p11 = scmp.lt.s32.totalorder %s404_s2, %s404_s2 }
  0x2f   :  { %p411_p12 = por %p410_p11, %p409_p9 }
  0x31   :  { %p412_p0 = pnand %p411_p12, %p405_p8 }
  0x33   :  { %415 = shalt.err (!%p412_p0)
}
  0x34   :  { %s450_s1 = smov [#allocation9]  }
  0x35   :  { %50 = dma.vmem_to_smem %s48_s11, 16, %s450_s1, [#allocation6]  }
  0x36   :  { %438 = dma.done.wait [#allocation4], 512  }
  0x37   :  { %439 = vsyncadd [#allocation4], 4294966784 }
  0x38   :  { %440 = dma.done.wait [#allocation8], 256  }
  0x39   :  { %441 = vsyncadd [#allocation8], 4294967040 }
  0x3a   :  { %442 = dma.done.wait [#allocation6], 16  }
  0x3b   :  { %443 = vsyncadd [#allocation6], 4294967280 }
  0x3c   :  { %62 = sfence }
  0x3d   :  { %s339_s16 = sld [smem:[#allocation9 + $0x1]]  ;;  %s340_s21 = sld [smem:[#allocation9 + $0x2]]  ;;  %v514_v0 = vld [vmem:[#allocation3 + $0x10] sm:$0xff]  ;;  %v516_v1 = vld [vmem:[#allocation3] sm:$0xff]  ;;  %v518_v3 = vld [vmem:[#allocation3 + $0x18] sm:$0xff]  ;;  %vm133_vm0 = vcmask 1046528  }
  0x3e   :  { %s342_s22 = sld [smem:[#allocation9 + $0x4]]  ;;  %v520_v4 = vld [vmem:[#allocation3 + $0x8] sm:$0xff]  ;;  %s343_s19 = sld [smem:[#allocation9 + $0x5]]  ;;  %v538_v18 = vld [vmem:[#allocation7] sm:$0xff]  ;;  %vm227_vm1 = vcmask 1045504   ;;  %vm93_vm2 = vcmask 1039360  }
  0x3f   :  { %s451_s23 = smov 127   ;;  %v536_v17 = vld [vmem:[#allocation7 + $0x8] sm:$0xff]  ;;  %s345_s24 = sld [smem:[#allocation9 + $0x7]]  ;;  %vm118_vm3 = vcmask 1031168  }
  0x40   :  { %s452_s25 = smov 126   ;;  %s341_s26 = sld [smem:[#allocation9 + $0x3]] }
  0x41   :  { %s344_s27 = sld [smem:[#allocation9 + $0x6]]  ;;  %s561_s28 = sld [smem:[#allocation9 + $0x8]] }
  0x42   :  { %s71_s29 = sld [smem:[#allocation9]]  ;;  %s453_s6 = smov [#allocation10]  }
  0x43   :  { %v76_v2 = vstv %s339_s16  ;;  %v101_v9 = vstv %s340_s21  ;;  %s324_s7 = sshll.u32 %s453_s6, 4  ;;  %s325_s7 = int_to_ptr.vmem [resolvable:$true] %s324_s7 }
  0x44   :  { %v79_v5 = vmul.f32 %v76_v2, %v514_v0  ;;  %v77_v6 = vmul.f32 %v76_v2, %v516_v1  ;;  %v80_v7 = vmul.f32 %v76_v2, %v518_v3  ;;  %v78_v8 = vmul.f32 %v76_v2, %v520_v4  ;;  %s416_s8 = scalar_lea.vmem %s325_s7, 256  ;;  %p421_p13 = scmp.lt.s32.totalorder %s325_s7, %s325_s7 }
  0x45   :  { %v144_v10 = vstv %s342_s22  ;;  %v103_v11 = vmul.f32 %v101_v9, %v520_v4  ;;  %v102_v12 = vmul.f32 %v101_v9, %v516_v1  ;;  %v182_v19 = vstv %s343_s19  ;;  %p417_p10 = scmp.ne.s32.totalorder %s325_s7, %s416_s8  ;;  %p422_p1 = scmp.lt.s32.totalorder %s416_s8, %s416_s8 }
  0x46   :  { %89 = vrot.lane.b32.xlu1 %v79_v5, %s451_s23  ;;  %85 = vrot.lane.b32.xlu0 %v77_v6, %s451_s23  ;;  %v146_v13 = vmul.f32 %v144_v10, %v520_v4  ;;  %v148_v14 = vmul.f32 %v144_v10, %v518_v3  ;;  %v145_v15 = vmul.f32 %v144_v10, %v516_v1  ;;  %v238_v41 = vstv %s345_s24 }
  0x47   :  { %v147_v16 = vmul.f32 %v144_v10, %v514_v0  ;;  %v105_v20 = vmul.f32 %v101_v9, %v518_v3  ;;  %v104_v21 = vmul.f32 %v101_v9, %v514_v0  ;;  %v150_v23 = vmul.f32 %v144_v10, %v536_v17  ;;  %p423_p2 = por %p422_p1, %p421_p13 }
  0x48   :  { %v160_v22 = vrot.slane %v146_v13, 1  ;;  %v149_v24 = vmul.f32 %v144_v10, %v538_v18  ;;  %v184_v25 = vmul.f32 %v182_v19, %v520_v4  ;;  %v161_v26 = vrot.slane %v148_v14, 1 }
  0x49   :  { %v157_v27 = vrot.slane %v145_v15, 1  ;;  %v158_v28 = vrot.slane %v147_v16, 1  ;;  %v186_v29 = vmul.f32 %v182_v19, %v518_v3  ;;  %v183_v30 = vmul.f32 %v182_v19, %v516_v1  ;;  %p424_p3 = pnand %p423_p2, %p417_p10 }
  0x4a   :  { %91 = vrot.lane.b32.xlu1 %v80_v7, %s451_s23  ;;  %87 = vrot.lane.b32.xlu0 %v78_v8, %s451_s23  ;;  %v185_v31 = vmul.f32 %v182_v19, %v514_v0  ;;  %v165_v32 = vrot.slane %v150_v23, 1  ;;  %v163_v33 = vrot.slane %v149_v24, 1  ;;  %v198_v34 = vrot.slane %v184_v25, 1 }
  0x4b   :  { %v162_v35 = vsel %vm133_vm0, %v160_v22, %v161_v26  ;;  %v159_v36 = vsel %vm133_vm0, %v157_v27, %v158_v28  ;;  %v199_v37 = vrot.slane %v186_v29, 1  ;;  %v188_v38 = vmul.f32 %v182_v19, %v536_v17 }
  0x4c   :  { %v195_v39 = vrot.slane %v183_v30, 1  ;;  %v196_v40 = vrot.slane %v185_v31, 1  ;;  %v166_v42 = vsel %vm133_vm0, %v161_v26, %v165_v32  ;;  %v164_v43 = vsel %vm133_vm0, %v158_v28, %v163_v33 }
  0x4d   :  { %v187_v44 = vmul.f32 %v182_v19, %v538_v18  ;;  %v200_v45 = vsel %vm133_vm0, %v198_v34, %v199_v37  ;;  %v203_v46 = vrot.slane %v188_v38, 1  ;;  %v126_v47 = vstv %s341_s26 }
  0x4e   :  { %112 = vrot.lane.b32.xlu1 %v103_v11, %s452_s25  ;;  %110 = vrot.lane.b32.xlu0 %v102_v12, %s452_s25  ;;  %v220_v48 = vstv %s344_s27  ;;  %v240_v49 = vmul.f32 %v238_v41, %v520_v4  ;;  %v242_v50 = vmul.f32 %v238_v41, %v518_v3  ;;  %v239_v51 = vmul.f32 %v238_v41, %v516_v1 }
  0x4f   :  { %v127_v52 = vmul.f32 %v126_v47, %v516_v1  ;;  %v197_v53 = vsel %vm133_vm0, %v195_v39, %v196_v40  ;;  %v128_v54 = vmul.f32 %v126_v47, %v514_v0  ;;  %v129_v55 = vmul.f32 %v126_v47, %v538_v18 }
  0x50   :  { %v221_v56 = vmul.f32 %v220_v48, %v516_v1  ;;  %v201_v57 = vrot.slane %v187_v44, 1  ;;  %v222_v59 = vmul.f32 %v220_v48, %v514_v0  ;;  %v223_v60 = vmul.f32 %v220_v48, %v538_v18 }
  0x51   :  { %v134_v58 = vrot.slane %v127_v52, 1  ;;  %v241_v61 = vmul.f32 %v238_v41, %v514_v0  ;;  %v135_v62 = vrot.slane %v128_v54, 1  ;;  %v137_v63 = vrot.slane %v129_v55, 1 }
  0x52   :  { %116 = vrot.lane.b32.xlu1 %v105_v20, %s452_s25  ;;  %114 = vrot.lane.b32.xlu0 %v104_v21, %s452_s25  ;;  %v228_v2 = vrot.slane %v221_v56, 2  ;;  %v244_v5 = vmul.f32 %v238_v41, %v536_v17  ;;  %v229_v6 = vrot.slane %v222_v59, 2  ;;  %v231_v7 = vrot.slane %v223_v60, 2 }
  0x53   :  { %v204_v8 = vsel %vm133_vm0, %v199_v37, %v203_v46  ;;  %v254_v9 = vrot.slane %v240_v49, 2  ;;  %v579_v10 = vsel %vm133_vm0, %v134_v58, %v135_v62  ;;  %v582_v11 = vsel %vm133_vm0, %v135_v62, %v137_v63 }
  0x54   :  { %v255_v12 = vrot.slane %v242_v50, 2  ;;  %v243_v13 = vmul.f32 %v238_v41, %v538_v18  ;;  %v588_v14 = vsel %vm227_vm1, %v228_v2, %v229_v6  ;;  %v591_v15 = vsel %vm227_vm1, %v229_v6, %v231_v7 }
  0x55   :  { %v202_v16 = vsel %vm133_vm0, %v196_v40, %v201_v57  ;;  %v251_v19 = vrot.slane %v239_v51, 2  ;;  %v252_v20 = vrot.slane %v241_v61, 2  ;;  %v276_v21 = vstv %s561_s28 }
  0x56   :  { %169 = vrot.lane.b32.xlu1 %v162_v35, %s451_s23  ;;  %167 = vrot.lane.b32.xlu0 %v159_v36, %s451_s23  ;;  %v256_v22 = vsel %vm227_vm1, %v254_v9, %v255_v12  ;;  %v259_v23 = vrot.slane %v244_v5, 2  ;;  %v257_v24 = vrot.slane %v243_v13, 2  ;;  %v278_v25 = vmul.f32 %v276_v21, %v520_v4 }
  0x57   :  { %v253_v26 = vsel %vm227_vm1, %v251_v19, %v252_v20  ;;  %v280_v27 = vmul.f32 %v276_v21, %v518_v3  ;;  %v277_v28 = vmul.f32 %v276_v21, %v516_v1  ;;  %v279_v29 = vmul.f32 %v276_v21, %v514_v0 }
  0x58   :  { %v260_v30 = vsel %vm227_vm1, %v255_v12, %v259_v23  ;;  %v258_v31 = vsel %vm227_vm1, %v252_v20, %v257_v24  ;;  %v292_v32 = vrot.slane %v278_v25, 2  ;;  %v282_v33 = vmul.f32 %v276_v21, %v536_v17 }
  0x59   :  { %v293_v4 = vrot.slane %v280_v27, 2  ;;  %v289_v34 = vrot.slane %v277_v28, 2  ;;  %v290_v35 = vrot.slane %v279_v29, 2  ;;  %v281_v3 = vmul.f32 %v276_v21, %v538_v18 }
  0x5a   :  { %173 = vrot.lane.b32.xlu1 %v166_v42, %s451_s23  ;;  %171 = vrot.lane.b32.xlu0 %v164_v43, %s451_s23  ;;  %v297_v38 = vrot.slane %v282_v33, 2  ;;  %v72_v42 = vstv %s71_s29 }
  0x5b   :  { %v294_v36 = vsel %vm227_vm1, %v292_v32, %v293_v4  ;;  %v291_v37 = vsel %vm227_vm1, %v289_v34, %v290_v35  ;;  %v295_v39 = vrot.slane %v281_v3, 2  ;;  %v74_v47 = vmul.f32 %v72_v42, %v514_v0 }
  0x5c   :  { %v298_v17 = vsel %vm227_vm1, %v293_v4, %v297_v38 }
  0x5d   :  { %v296_v40 = vsel %vm227_vm1, %v290_v35, %v295_v39 }
  0x5e   :  { %207 = vrot.lane.b32.xlu1 %v200_v45, %s452_s25  ;;  %205 = vrot.lane.b32.xlu0 %v197_v53, %s452_s25  ;;  %v73_v45 = vmul.f32 %v72_v42, %v516_v1 }
  0x62   :  { %211 = vrot.lane.b32.xlu1 %v204_v8, %s452_s25  ;;  %209 = vrot.lane.b32.xlu0 %v202_v16, %s452_s25 }
  0x66   :  { %263 = vrot.lane.b32.xlu1 %v256_v22, %s451_s23  ;;  %261 = vrot.lane.b32.xlu0 %v253_v26, %s451_s23 }
  0x6a   :  { %267 = vrot.lane.b32.xlu1 %v260_v30, %s451_s23  ;;  %265 = vrot.lane.b32.xlu0 %v258_v31, %s451_s23 }
  0x6e   :  { %301 = vrot.lane.b32.xlu1 %v294_v36, %s452_s25  ;;  %299 = vrot.lane.b32.xlu0 %v291_v37, %s452_s25 }
  0x72   :  { %305 = vrot.lane.b32.xlu1 %v298_v17, %s452_s25  ;;  %303 = vrot.lane.b32.xlu0 %v296_v40, %s452_s25 }
  0xb8   :  { %v90_v18 = vpop.permute.xlu1 %89  ;;  %v86_v41 = vpop.permute.xlu0 %85 }
  0xbc   :  { %v92_v43 = vpop.permute.xlu1 %91  ;;  %v88_v44 = vpop.permute.xlu0 %87 }
  0xbd   :  { %v94_v46 = vsel %vm93_vm2, %v86_v41, %v88_v44  ;;  %v95_v51 = vsel %vm93_vm2, %v90_v18, %v92_v43 }
  0xbe   :  { %v98_v48 = vadd.f32 %v94_v46, %v73_v45  ;;  %v99_v54 = vadd.f32 %v95_v51, %v74_v47 }
  0xc0   :  { %v113_v49 = vpop.permute.xlu1 %112  ;;  %v111_v50 = vpop.permute.xlu0 %110 }
  0xc1   :  { %v119_v52 = vsel %vm118_vm3, %v111_v50, %v113_v49 }
  0xc2   :  { %v123_v53 = vadd.f32 %v119_v52, %v98_v48 }
  0xc4   :  { %v117_v55 = vpop.permute.xlu1 %116  ;;  %v115_v56 = vpop.permute.xlu0 %114  ;;  %v141_v57 = vadd.f32 %v579_v10, %v123_v53 }
  0xc5   :  { %v120_v1 = vsel %vm118_vm3, %v115_v56, %v117_v55 }
  0xc6   :  { %v124_v58 = vadd.f32 %v120_v1, %v99_v54 }
  0xc8   :  { %v170_v59 = vpop.permute.xlu1 %169  ;;  %v168_v60 = vpop.permute.xlu0 %167  ;;  %v142_v0 = vadd.f32 %v582_v11, %v124_v58 }
  0xc9   :  { %v175_v63 = vsel %vm93_vm2, %v168_v60, %v170_v59 }
  0xca   :  { %v179_v2 = vadd.f32 %v175_v63, %v141_v57 }
  0xcc   :  { %v174_v61 = vpop.permute.xlu1 %173  ;;  %v172_v62 = vpop.permute.xlu0 %171 }
  0xcd   :  { %v176_v7 = vsel %vm93_vm2, %v172_v62, %v174_v61 }
  0xce   :  { %v180_v10 = vadd.f32 %v176_v7, %v142_v0 }
  0xd0   :  { %v208_v5 = vpop.permute.xlu1 %207  ;;  %v206_v6 = vpop.permute.xlu0 %205 }
  0xd1   :  { %v213_v8 = vsel %vm118_vm3, %v206_v6, %v208_v5 }
  0xd2   :  { %v217_v9 = vadd.f32 %v213_v8, %v179_v2 }
  0xd4   :  { %v212_v12 = vpop.permute.xlu1 %211  ;;  %v210_v13 = vpop.permute.xlu0 %209  ;;  %v235_v16 = vadd.f32 %v588_v14, %v217_v9  ;;  %v314_v14 = vstv %s655_s3 }
  0xd5   :  { %v214_v19 = vsel %vm118_vm3, %v210_v13, %v212_v12 }
  0xd6   :  { %v218_v11 = vadd.f32 %v214_v19, %v180_v10 }
  0xd8   :  { %v264_v20 = vpop.permute.xlu1 %263  ;;  %v262_v21 = vpop.permute.xlu0 %261  ;;  %v236_v22 = vadd.f32 %v591_v15, %v218_v11 }
  0xd9   :  { %v269_v25 = vsel %vm93_vm2, %v262_v21, %v264_v20 }
  0xda   :  { %v273_v26 = vadd.f32 %v269_v25, %v235_v16 }
  0xdc   :  { %v268_v23 = vpop.permute.xlu1 %267  ;;  %v266_v24 = vpop.permute.xlu0 %265 }
  0xdd   :  { %v270_v29 = vsel %vm93_vm2, %v266_v24, %v268_v23 }
  0xde   :  { %v274_v32 = vadd.f32 %v270_v29, %v236_v22 }
  0xe0   :  { %v302_v27 = vpop.permute.xlu1 %301  ;;  %v300_v28 = vpop.permute.xlu0 %299 }
  0xe1   :  { %v307_v30 = vsel %vm118_vm3, %v300_v28, %v302_v27 }
  0xe2   :  { %v311_v31 = vadd.f32 %v307_v30, %v273_v26 }
  0xe4   :  { %v315_v33 = vadd.f32 %v314_v14, %v311_v31  ;;  %v306_v4 = vpop.permute.xlu1 %305  ;;  %v304_v15 = vpop.permute.xlu0 %303 }
  0xe5   :  { %v308_v34 = vsel %vm118_vm3, %v304_v15, %v306_v4 }
  0xe6   :  { %317 = vst [vmem:[#allocation10] sm:$0xff] %v315_v33  ;;  %v312_v35 = vadd.f32 %v308_v34, %v274_v32 }
  0xe8   :  { %v316_v3 = vadd.f32 %v314_v14, %v312_v35 }
  0xea   :  { %318 = vst [vmem:[#allocation10 + $0x8] sm:$0xff] %v316_v3 }
  0xeb   :  { %427 = shalt.err (!%p424_p3)
}
  0xec   :  { %s428_s10 = scalar_lea.hbm %s656_s4, 256 }
  0xed   :  { %p429_p4 = scmp.ne.s32.totalorder %s656_s4, %s428_s10  ;;  %p432_p5 = scmp.lt.u32.totalorder %s428_s10, %s656_s4 }
  0xef   :  { %p434_p6 = pnand %p432_p5, %p429_p4 }
  0xf1   :  { %437 = shalt.err (!%p434_p6)
}
  0xf2   :  { %s454_s15 = smov 128   ;;  %s455_s17 = smov 8  }
  0xf3   :  { %330 = dma.vmem_to_hbm [thread:$0]  %s325_s7, 256, %s656_s4, [#allocation5], %s454_s15, %s454_s15, %s455_s17  }
  0xf4   :  { %444 = dma.done.wait [#allocation5], 256  }
  0xf5   :  { %445 = vsyncadd [#allocation5], 4294967040 }
  0xf6   :  { %334 = vsyncpa [#allocation4], 1 }
  0xf7   :  { %335 = vsyncpa [#allocation8], 1 }
  0xf8   :  { %336 = vsyncpa [#allocation5], 1 }
  0xf9   :  { %337 = vsyncpa [#allocation6], 1 }

</bundles_post_ra>
